<compile_context>
chip_gen: v7x
topology: tpu7x:2x2x1
jax: 0.10.0
libtpu: 0.0.40
codegen_flags: <defaults>
</compile_context>

<pallas_src>
import math

import jax
import jax.numpy as jnp
import numpy as np
from jax.experimental import pallas as pl
from jax.experimental.pallas import tpu as pltpu


# ----------------------------------------------------------------------------
# Kernels
# ----------------------------------------------------------------------------
def _micron_train_kernel(x_ref, wh_ref, bh_ref, wp_ref, bp_ref,
                         drug_ref, res_ref):
    # x_ref   : [R, I]   block of R = bt*S flattened (batch*seq) rows
    # wh_ref  : [I, H]   health_net weight        bh_ref: [1, H]
    # wp_ref  : [H, H]   prescription_net weight  bp_ref: [1, H]
    # drug_ref, res_ref : [R, H]
    bp_row = bp_ref[...]                                   # read once, reuse
    h = jnp.dot(x_ref[...], wh_ref[...],
                preferred_element_type=jnp.float32) + bh_ref[...]          # [R, H]
    drug = jnp.dot(h, wp_ref[...],
                   preferred_element_type=jnp.float32) + bp_row            # [R, H]
    drug_ref[...] = drug.astype(drug_ref.dtype)

    # Residual prescription without a third matmul:
    #   (h[r] - h[r+1]) @ Wp + bp == drug[r] - drug[r+1] + bp
    # Forward-neighbor via an XLU sublane rotate (pltpu.roll follows jnp.roll:
    # out[i] = in[(i - shift) % R], so shift = R-1 (== -1 mod R) gives
    # nxt[r] = drug[r+1]).  Rows at sequence boundaries (r % S == S-1, incl.
    # the block's wrap-around last row) are garbage and dropped by the wrapper.
    R = drug.shape[0]
    nxt = pltpu.roll(drug, shift=R - 1, axis=0)
    res_ref[...] = (drug - nxt + bp_row).astype(res_ref.dtype)


def _micron_eval_kernel(x_ref, wh_ref, bh_ref, wp_ref, bp_ref, drug_ref):
    # Inference path: only drug_rep is produced (no residual compute / store).
    h = jnp.dot(x_ref[...], wh_ref[...],
                preferred_element_type=jnp.float32) + bh_ref[...]
    drug = jnp.dot(h, wp_ref[...],
                   preferred_element_type=jnp.float32) + bp_ref[...]
    drug_ref[...] = drug.astype(drug_ref.dtype)


# ----------------------------------------------------------------------------
# Block-size / generation-aware tiling helpers
# ----------------------------------------------------------------------------
def _tensorcores_per_device():
    """Best-effort TensorCore count per JAX device.

    v5e / v6e expose one TensorCore per device (grid is a serial loop there);
    v4 / v5p / v7x expose two, so >=2 parallel grid steps are needed to keep
    both busy.  Defaults to 1 (no forced split) if detection fails.
    """
    try:
        kind = jax.devices()[0].device_kind.lower()
    except Exception:  # pragma: no cover - defensive
        return 1
    if ("lite" in kind) or ("v5e" in kind) or ("v6" in kind):
        return 1
    if ("v4" in kind) or ("v5p" in kind) or ("v7" in kind) or ("7x" in kind):
        return 2
    return 1


def _choose_block_batches(B, S, I, H, *, training=True, itemsize=4,
                          target_rows=1024, vmem_budget=12 << 20):
    """Pick how many whole sequences to process per grid step.

    Blocks always contain whole sequences so the in-kernel neighbor shift never
    crosses a block boundary (only sequence-boundary rows, which are dropped).
    """
    # Granularity so that (bt * S) is a multiple of 8 (sublane-aligned blocks).
    unit = 8 // math.gcd(S, 8)
    bt = max(1, target_rows // S)
    bt = max(unit, bt - bt % unit)

    # Conservative per-step VMEM estimate with lanes padded to 128:
    #   2x double-buffered x block + 2x double-buffered outputs + temporaries.
    i_pad = -(-I // 128) * 128
    h_pad = -(-H // 128) * 128
    n_out = 2 if training else 1
    per_row = itemsize * (2 * i_pad + (2 * n_out + 2) * h_pad)
    while bt > unit and bt * S * per_row > vmem_budget:
        bt -= unit

    # Force >=2 grid steps only on dual-TC chips (v4/v5p/v7x megacore); on
    # single-TC v5e/v6e a single large block maximizes HBM-roofline efficiency.
    if _tensorcores_per_device() >= 2 and B > unit:
        half = -(-B // 2)
        bt = min(bt, max(unit, half - half % unit))

    # If one block covers everything, use a single full-extent block.
    return B if bt >= B else bt


# ----------------------------------------------------------------------------
# Wrapper
# ----------------------------------------------------------------------------
def micron_layer(x, wh, bh, wp, bp, training=True):
    """MICRON forward.

    x:  [B, S, I] float32
    wh: [I, H], bh: [H]   (health_net, weights pre-transposed to [in, out])
    wp: [H, H], bp: [H]   (prescription_net)
    """
    B, S, I = x.shape
    H = wh.shape[1]
    bh2 = bh.reshape(1, H)
    bp2 = bp.reshape(1, H)

    # Flatten (batch, seq) -> rows and block `bt` whole sequences per grid step.
    bt = _choose_block_batches(B, S, I, H, training=training)
    Bp = -(-B // bt) * bt                      # pad batch to a multiple of bt
    xf = x.reshape(B * S, I)
    if Bp != B:
        xf = jnp.concatenate(
            [xf, jnp.zeros(((Bp - B) * S, I), x.dtype)], axis=0)
    R = bt * S                                 # rows per grid step
    grid = (Bp // bt,)

    in_specs = [
        pl.BlockSpec((R, I), lambda i: (i, 0)),    # x rows, per-step tile
        pl.BlockSpec((I, H), lambda i: (0, 0)),    # Wh (resident)
        pl.BlockSpec((1, H), lambda i: (0, 0)),    # bh
        pl.BlockSpec((H, H), lambda i: (0, 0)),    # Wp (resident)
        pl.BlockSpec((1, H), lambda i: (0, 0)),    # bp
    ]
    out_spec = pl.BlockSpec((R, H), lambda i: (i, 0))
    cparams = pltpu.CompilerParams(dimension_semantics=("parallel",))

    if training:
        drug_f, res_f = pl.pallas_call(
            _micron_train_kernel,
            out_shape=(
                jax.ShapeDtypeStruct((Bp * S, H), x.dtype),
                jax.ShapeDtypeStruct((Bp * S, H), x.dtype),
            ),
            grid_spec=pltpu.PrefetchScalarGridSpec(
                num_scalar_prefetch=0,
                grid=grid,
                in_specs=in_specs,
                out_specs=[out_spec, out_spec],
            ),
            compiler_params=cparams,
        )(xf, wh, bh2, wp, bp2)
        drug = drug_f.reshape(Bp, S, H)[:B]
        res = res_f.reshape(Bp, S, H)[:B, :S - 1]   # drop seq-boundary rows
        return drug, res

    drug_f = pl.pallas_call(
        _micron_eval_kernel,
        out_shape=jax.ShapeDtypeStruct((Bp * S, H), x.dtype),
        grid_spec=pltpu.PrefetchScalarGridSpec(
            num_scalar_prefetch=0,
            grid=grid,
            in_specs=in_specs,
            out_specs=out_spec,
        ),
        compiler_params=cparams,
    )(xf, wh, bh2, wp, bp2)
    return drug_f.reshape(Bp, S, H)[:B]


# ----------------------------------------------------------------------------
# Reference + demo
# ----------------------------------------------------------------------------
def _reference(x, wh, bh, wp, bp):
    h = jnp.einsum("bsi,ih->bsh", x, wh) + bh
    drug = jnp.einsum("bsh,hk->bsk", h, wp) + bp
    resid = h[:, :-1, :] - h[:, 1:, :]
    drug_res = jnp.einsum("bsh,hk->bsk", resid, wp) + bp
    return drug, drug_res


def _make_params(key, input_size, hidden_size):
    kwh, kbh, kwp, kbp = jax.random.split(key, 4)
    bound_h = 1.0 / np.sqrt(input_size)
    bound_p = 1.0 / np.sqrt(hidden_size)
    wh = jax.random.uniform(kwh, (input_size, hidden_size), jnp.float32,
                            -bound_h, bound_h)
    bh = jax.random.uniform(kbh, (hidden_size,), jnp.float32, -bound_h, bound_h)
    wp = jax.random.uniform(kwp, (hidden_size, hidden_size), jnp.float32,
                            -bound_p, bound_p)
    bp = jax.random.uniform(kbp, (hidden_size,), jnp.float32, -bound_p, bound_p)
    return wh, bh, wp, bp


if __name__ == "__main__":
    INPUT, HIDDEN = 5, 32
    key = jax.random.PRNGKey(0)
    kx, kp, kx2 = jax.random.split(key, 3)
    wh, bh, wp, bp = _make_params(kp, INPUT, HIDDEN)

    # --- main small case: B=3, S=8 -------------------------------------------
    B, S = 3, 8
    x = jax.random.normal(kx, (B, S, INPUT), dtype=jnp.float32)

    drug_rep, drug_residual_rep = micron_layer(x, wh, bh, wp, bp, training=True)
    drug_rep = jax.block_until_ready(drug_rep)
    drug_residual_rep = jax.block_until_ready(drug_residual_rep)

    ref_drug, ref_res = _reference(x, wh, bh, wp, bp)
    assert drug_rep.shape == (B, S, HIDDEN)
    assert drug_residual_rep.shape == (B, S - 1, HIDDEN)
    np.testing.assert_allclose(np.asarray(drug_rep), np.asarray(ref_drug),
                               rtol=1e-5, atol=1e-5)
    np.testing.assert_allclose(np.asarray(drug_residual_rep),
                               np.asarray(ref_res), rtol=1e-5, atol=1e-5)

    # Eval-mode path (returns only drug_rep; residual kernel is skipped)
    drug_eval = jax.block_until_ready(
        micron_layer(x, wh, bh, wp, bp, training=False))
    np.testing.assert_allclose(np.asarray(drug_eval), np.asarray(ref_drug),
                               rtol=1e-5, atol=1e-5)

    # --- second small case: B=16 (exercises the multi-sequence block path /
    #     the 2-step parallel grid on dual-TC chips) ---------------------------
    B2, S2 = 16, 8
    x2 = jax.random.normal(kx2, (B2, S2, INPUT), dtype=jnp.float32)
    d2, r2 = micron_layer(x2, wh, bh, wp, bp, training=True)
    d2 = jax.block_until_ready(d2)
    r2 = jax.block_until_ready(r2)
    ref_d2, ref_r2 = _reference(x2, wh, bh, wp, bp)
    np.testing.assert_allclose(np.asarray(d2), np.asarray(ref_d2),
                               rtol=1e-5, atol=1e-5)
    np.testing.assert_allclose(np.asarray(r2), np.asarray(ref_r2),
                               rtol=1e-5, atol=1e-5)

    print("KERNEL_OK")
</pallas_src>

<mosaic_0001>
module attributes {stable_mosaic.version = 11 : i64} {
  func.func @_micron_train_kernel(%arg0: i32, %arg1: memref<24x5xf32, #tpu.memory_space<vmem>>, %arg2: memref<5x32xf32, #tpu.memory_space<vmem>>, %arg3: memref<1x32xf32, #tpu.memory_space<vmem>>, %arg4: memref<32x32xf32, #tpu.memory_space<vmem>>, %arg5: memref<1x32xf32, #tpu.memory_space<vmem>>, %arg6: memref<24x32xf32, #tpu.memory_space<vmem>>, %arg7: memref<24x32xf32, #tpu.memory_space<vmem>>) attributes {dimension_semantics = [#tpu.dimension_semantics<parallel>], iteration_bounds = array<i64: 1>, scalar_prefetch = 0 : i64, scratch_operands = 0 : i64, tpu.core_type = #tpu.core_type<tc>, window_params = [{transform_indices = @transform_0, window_bounds = array<i64: 24, 5>}, {pipeline_mode = #tpu.pipeline_mode<synchronous>, transform_indices = @transform_1, window_bounds = array<i64: 5, 32>}, {pipeline_mode = #tpu.pipeline_mode<synchronous>, transform_indices = @transform_2, window_bounds = array<i64: 1, 32>}, {pipeline_mode = #tpu.pipeline_mode<synchronous>, transform_indices = @transform_3, window_bounds = array<i64: 32, 32>}, {pipeline_mode = #tpu.pipeline_mode<synchronous>, transform_indices = @transform_4, window_bounds = array<i64: 1, 32>}, {transform_indices = @transform_5, window_bounds = array<i64: 24, 32>}, {transform_indices = @transform_6, window_bounds = array<i64: 24, 32>}]} {
    %c0 = arith.constant 0 : index
    %c0_0 = arith.constant 0 : index
    %0 = vector.load %arg5[%c0, %c0_0] : memref<1x32xf32, #tpu.memory_space<vmem>>, vector<1x32xf32>
    %c0_1 = arith.constant 0 : index
    %c0_2 = arith.constant 0 : index
    %1 = vector.load %arg1[%c0_1, %c0_2] : memref<24x5xf32, #tpu.memory_space<vmem>>, vector<24x5xf32>
    %c0_3 = arith.constant 0 : index
    %c0_4 = arith.constant 0 : index
    %2 = vector.load %arg2[%c0_3, %c0_4] : memref<5x32xf32, #tpu.memory_space<vmem>>, vector<5x32xf32>
    %cst = arith.constant dense<0.000000e+00> : vector<24x32xf32>
    %3 = tpu.matmul %1, %2, %cst {dimension_numbers = #tpu.dot_dimension_numbers<[1], [0], [0], [1], [0, 0, 1, 1], [], []>} : vector<24x5xf32>, vector<5x32xf32>, vector<24x32xf32> -> vector<24x32xf32>
    %c0_5 = arith.constant 0 : index
    %c0_6 = arith.constant 0 : index
    %4 = vector.load %arg3[%c0_5, %c0_6] : memref<1x32xf32, #tpu.memory_space<vmem>>, vector<1x32xf32>
    %5 = vector.broadcast %4 : vector<1x32xf32> to vector<24x32xf32>
    %6 = arith.addf %3, %5 : vector<24x32xf32>
    %c0_7 = arith.constant 0 : index
    %c0_8 = arith.constant 0 : index
    %7 = vector.load %arg4[%c0_7, %c0_8] : memref<32x32xf32, #tpu.memory_space<vmem>>, vector<32x32xf32>
    %cst_9 = arith.constant dense<0.000000e+00> : vector<24x32xf32>
    %8 = tpu.matmul %6, %7, %cst_9 {dimension_numbers = #tpu.dot_dimension_numbers<[1], [0], [0], [1], [0, 0, 1, 1], [], []>} : vector<24x32xf32>, vector<32x32xf32>, vector<24x32xf32> -> vector<24x32xf32>
    %9 = vector.broadcast %0 : vector<1x32xf32> to vector<24x32xf32>
    %10 = arith.addf %8, %9 : vector<24x32xf32>
    %c0_10 = arith.constant 0 : index
    %c0_11 = arith.constant 0 : index
    %11 = vector.load %arg6[%c0_10, %c0_11] : memref<24x32xf32, #tpu.memory_space<vmem>>, vector<24x32xf32>
    tpu.vector_store %arg6[%c0_10, %c0_11], %10 {strides = array<i32>} : memref<24x32xf32, #tpu.memory_space<vmem>>, vector<24x32xf32>,
    %c23_i32 = arith.constant 23 : i32
    %12 = tpu.dynamic_rotate %10 by %c23_i32 dim 0 : vector<24x32xf32>, i32 -> vector<24x32xf32>
    %13 = arith.subf %10, %12 : vector<24x32xf32>
    %14 = vector.broadcast %0 : vector<1x32xf32> to vector<24x32xf32>
    %15 = arith.addf %13, %14 : vector<24x32xf32>
    %c0_12 = arith.constant 0 : index
    %c0_13 = arith.constant 0 : index
    %16 = vector.load %arg7[%c0_12, %c0_13] : memref<24x32xf32, #tpu.memory_space<vmem>>, vector<24x32xf32>
    tpu.vector_store %arg7[%c0_12, %c0_13], %15 {strides = array<i32>} : memref<24x32xf32, #tpu.memory_space<vmem>>, vector<24x32xf32>,
    return
  }
  func.func @transform_0(%arg0: i32) -> (i32, i32) {
    %c0_i32 = arith.constant 0 : i32
    %c0_i32_0 = arith.constant 0 : i32
    return %arg0, %c0_i32 : i32, i32
  }
  func.func @transform_1(%arg0: i32) -> (i32, i32) {
    %c0_i32 = arith.constant 0 : i32
    %c0_i32_0 = arith.constant 0 : i32
    %c0_i32_1 = arith.constant 0 : i32
    return %c0_i32, %c0_i32_0 : i32, i32
  }
  func.func @transform_2(%arg0: i32) -> (i32, i32) {
    %c0_i32 = arith.constant 0 : i32
    %c0_i32_0 = arith.constant 0 : i32
    %c0_i32_1 = arith.constant 0 : i32
    return %c0_i32, %c0_i32_0 : i32, i32
  }
  func.func @transform_3(%arg0: i32) -> (i32, i32) {
    %c0_i32 = arith.constant 0 : i32
    %c0_i32_0 = arith.constant 0 : i32
    %c0_i32_1 = arith.constant 0 : i32
    return %c0_i32, %c0_i32_0 : i32, i32
  }
  func.func @transform_4(%arg0: i32) -> (i32, i32) {
    %c0_i32 = arith.constant 0 : i32
    %c0_i32_0 = arith.constant 0 : i32
    %c0_i32_1 = arith.constant 0 : i32
    return %c0_i32, %c0_i32_0 : i32, i32
  }
  func.func @transform_5(%arg0: i32) -> (i32, i32) {
    %c0_i32 = arith.constant 0 : i32
    %c0_i32_0 = arith.constant 0 : i32
    return %arg0, %c0_i32 : i32, i32
  }
  func.func @transform_6(%arg0: i32) -> (i32, i32) {
    %c0_i32 = arith.constant 0 : i32
    %c0_i32_0 = arith.constant 0 : i32
    return %arg0, %c0_i32 : i32, i32
  }
}

</mosaic_0001>

<bundles_post_ra>
// kernel: tpu_custom_call.1
= control target key start
LH: loop header
LB: loop body
LE: loop exit
PB: predicated region body
PF: predicated region fallthrough
CT: control target
= control target key end

     0   :  { %12 = vsyncpa [#allocation3], 0  ;;  %vm46_vm0 = vcmask 1044480   ;;  %v392_v2 = vmov 0.0   ;;  %vm393_vm1 = vmmov 0   ;;  %vm36_vm2 = vcmask 39936   ;;  %s515_s0 = inlined_call_operand.vmem [shape: f32[24,5], index: 0, kind: input, shape index: {}]   ;;  %s516_s1 = inlined_call_operand.vmem [shape: f32[5,32], index: 1, kind: input, shape index: {}]   ;;  %s517_s2 = inlined_call_operand.vmem [shape: f32[1,32], index: 2, kind: input, shape index: {}]   ;;  %s518_s3 = inlined_call_operand.vmem [shape: f32[32,32], index: 3, kind: input, shape index: {}]   ;;  %s519_s4 = inlined_call_operand.vmem [shape: f32[1,32], index: 4, kind: input, shape index: {}]   ;;  %s520_s5 = inlined_call_operand.hbm [shape: f32[24,32], index: 5, kind: output, shape index: {0}]   ;;  %s521_s6 = inlined_call_operand.hbm [shape: f32[24,32], index: 6, kind: output, shape index: {1}]  }
   0x1   :  { %v28_v0 = vld [vmem:[%s516_s1] sm:$0x1f]  ;;  %303 = vmatprep.subr.mxu0 %v392_v2  ;;  %305 = vmatprep.mubr.msk.f32.mxu0 %vm393_vm1, %v392_v2  ;;  %v394_v4 = vmov 0.0|0.0   ;;  %v131_v5 = vld [vmem:[%s518_s3 + $0x8] sm:$0xff] }
   0x2   :  { %v25_v1 = vld [vmem:[%s515_s0] sm:$0xff]  ;;  %304 = vmatpush3.msk.msra.mxu0 %vm46_vm0, %v28_v0  ;;  %331 = vmatprep.subr.bf16.mxu1 %v394_v4 }
   0x3   :  { %v130_v3 = vld [vmem:[%s518_s3] sm:$0xff] }
   0x4   :  { %13 = vsyncpa [#allocation5], 0  ;;  %306 = vmatmul.mubr.msk.f32.vlgmr.msra.gmra.mrb[0].mxu0 %vm36_vm2, %v25_v1  ;;  %v332_v6 = vpack.c.bf16 %v131_v5, %v130_v3  ;;  %322 = vmatprep.mubr.msk.f32.mxu1 %vm393_vm1, %v392_v2  ;;  %v26_v7 = vld [vmem:[%s515_s0 + $0x8] sm:$0xff]  ;;  %v27_v8 = vld [vmem:[%s515_s0 + $0x10] sm:$0xff]  ;;  %vm140_vm3 = vcmask 261120   ;;  %v236_v23 = vlaneseq }
   0x5   :  { %308 = vmatprep.mubr.msk.f32.mxu0 %vm393_vm1, %v392_v2  ;;  %v132_v9 = vld [vmem:[%s518_s3 + $0x10] sm:$0xff]  ;;  %v133_v10 = vld [vmem:[%s518_s3 + $0x18] sm:$0xff]  ;;  %v283_v12 = vld [vmem:[%s517_s2] ss:$0 sm:$0xff]  ;;  %s395_s3 = smov [#allocation2]  }
   0x6   :  { %333 = vmatpush3.bf16.msra.mxu1 %v332_v6  ;;  %v335_v11 = vpack.c.bf16 %v133_v10, %v132_v9  ;;  %v288_v22 = vld [vmem:[%s519_s4] ss:$0 sm:$0xff]  ;;  %v237_v27 = vshrl.u32 %v236_v23, 7  ;;  %s256_s14 = sshll.u32 %s395_s3, 4  ;;  %s257_s14 = int_to_ptr.vmem [resolvable:$true] %s256_s14 }
   0x7   :  { %334 = vmatprep.subr.bf16.mxu1 %v394_v4  ;;  %s344_s4 = scalar_lea.vmem %s257_s14, 384  ;;  %p349_p1 = scmp.lt.s32.totalorder %s257_s14, %s257_s14 }
   0x8   :  { %309 = vmatmul.mubr.msk.f32.gmra.mrb[2].mxu0 %vm36_vm2, %v26_v7  ;;  %vm238_vm4 = vcmp.lt.s32.totalorder %v237_v27, 7  ;;  %p345_p0 = scmp.ne.s32.totalorder %s257_s14, %s344_s4  ;;  %p350_p2 = scmp.lt.s32.totalorder %s344_s4, %s344_s4 }
   0x9   :  { %311 = vmatprep.mubr.msk.f32.mxu0 %vm393_vm1, %v392_v2 }
   0xa   :  { %336 = vmatpush3.bf16.msra.mxu1 %v335_v11  ;;  %p351_p3 = por %p350_p2, %p349_p1 }
   0xc   :  { %312 = vmatmul.mubr.msk.f32.gmra.mrb[4].mxu0 %vm36_vm2, %v27_v8  ;;  %p352_p4 = pnand %p351_p3, %p345_p0 }
  0xd7   :  { %v116_v13 = vpop.f32.mrb[0].mxu0 }
  0xd8   :  { %v117_v14 = vadd.f32 %v283_v12, %v116_v13  ;;  %v307_v15 = vpop.f32.mrb[1].mxu0 }
  0xda   :  { %323 = vmatmul.mubr.msk.f32.vlgmr.msra.gmra.mrb[0].mxu1 %vm140_vm3, %v117_v14 }
  0xdb   :  { %v121_v16 = vpop.f32.mrb[2].mxu0  ;;  %325 = vmatprep.mubr.msk.f32.mxu1 %vm393_vm1, %v392_v2 }
  0xdc   :  { %v122_v17 = vadd.f32 %v283_v12, %v121_v16  ;;  %v310_v18 = vpop.f32.mrb[3].mxu0 }
  0xde   :  { %326 = vmatmul.mubr.msk.f32.gmra.mrb[2].mxu1 %vm140_vm3, %v122_v17 }
  0xdf   :  { %v126_v19 = vpop.f32.mrb[4].mxu0  ;;  %328 = vmatprep.mubr.msk.f32.mxu1 %vm393_vm1, %v392_v2 }
  0xe0   :  { %v127_v20 = vadd.f32 %v283_v12, %v126_v19  ;;  %v313_v21 = vpop.f32.mrb[5].mxu0 }
  0xe2   :  { %329 = vmatmul.mubr.msk.f32.gmra.mrb[4].mxu1 %vm140_vm3, %v127_v20 }
 0x1ad   :  { %v216_v24 = vpop.f32.mrb[0].mxu1 }
 0x1ae   :  { %v217_v25 = vadd.f32 %v288_v22, %v216_v24  ;;  %v324_v26 = vpop.f32.mrb[1].mxu1 }
 0x1b0   :  { %230 = vst.msk [vmem:[#allocation2] sm:$0xff] %vm140_vm3, %v217_v25  ;;  %v233_v31 = vrot.slane %v217_v25, 1 }
 0x1b1   :  { %v221_v28 = vpop.f32.mrb[2].mxu1 }
 0x1b2   :  { %v222_v29 = vadd.f32 %v288_v22, %v221_v28  ;;  %v327_v30 = vpop.f32.mrb[3].mxu1 }
 0x1b4   :  { %231 = vst.msk [vmem:[#allocation2 + $0x8] sm:$0xff] %vm140_vm3, %v222_v29  ;;  %v234_v32 = vrot.slane %v222_v29, 1 }
 0x1b5   :  { %v226_v33 = vpop.f32.mrb[4].mxu1 }
 0x1b6   :  { %v227_v34 = vadd.f32 %v288_v22, %v226_v33  ;;  %v240_v35 = vsel %vm238_vm4, %v233_v31, %v234_v32  ;;  %v330_v36 = vpop.f32.mrb[5].mxu1 }
 0x1b7   :  { %v242_v37 = vsub.f32 %v217_v25, %v240_v35 }
 0x1b8   :  { %232 = vst.msk [vmem:[#allocation2 + $0x10] sm:$0xff] %vm140_vm3, %v227_v34  ;;  %v235_v38 = vrot.slane %v227_v34, 1 }
 0x1b9   :  { %v245_v39 = vadd.f32 %v288_v22, %v242_v37 }
 0x1ba   :  { %355 = shalt.err (!%p352_p4)
}
 0x1bb   :  { %s356_s17 = scalar_lea.hbm %s520_s5, 384 }
 0x1bc   :  { %p357_p5 = scmp.ne.s32.totalorder %s520_s5, %s356_s17  ;;  %p360_p6 = scmp.lt.u32.totalorder %s356_s17, %s520_s5 }
 0x1be   :  { %p362_p7 = pnand %p360_p6, %p357_p5 }
 0x1c0   :  { %365 = shalt.err (!%p362_p7)
}
 0x1c1   :  { %s396_s22 = smov 128   ;;  %s397_s23 = smov 8   ;;  %v239_v40 = vsel %vm238_vm4, %v234_v32, %v235_v38  ;;  %v241_v41 = vsel %vm238_vm4, %v235_v38, %v233_v31  ;;  %248 = vst.msk [vmem:[#allocation4] sm:$0xff] %vm140_vm3, %v245_v39 }
 0x1c2   :  { %262 = dma.vmem_to_hbm [thread:$0]  %s257_s14, 384, %s520_s5, [#allocation3], %s396_s22, %s396_s22, %s397_s23   ;;  %v243_v42 = vsub.f32 %v222_v29, %v239_v40  ;;  %v244_v43 = vsub.f32 %v227_v34, %v241_v41 }
 0x1c3   :  { %s398_s26 = smov [#allocation4]  }
 0x1c4   :  { %s268_s27 = sshll.u32 %s398_s26, 4  ;;  %v246_v44 = vadd.f32 %v288_v22, %v243_v42  ;;  %v247_v45 = vadd.f32 %v288_v22, %v244_v43  ;;  %s269_s27 = int_to_ptr.vmem [resolvable:$true] %s268_s27 }
 0x1c5   :  { %s366_s1 = scalar_lea.vmem %s269_s27, 384  ;;  %p371_p9 = scmp.lt.s32.totalorder %s269_s27, %s269_s27 }
 0x1c6   :  { %250 = vst.msk [vmem:[#allocation4 + $0x10] sm:$0xff] %vm140_vm3, %v247_v45  ;;  %249 = vst.msk [vmem:[#allocation4 + $0x8] sm:$0xff] %vm140_vm3, %v246_v44  ;;  %p367_p8 = scmp.ne.s32.totalorder %s269_s27, %s366_s1  ;;  %p372_p10 = scmp.lt.s32.totalorder %s366_s1, %s366_s1 }
 0x1c8   :  { %p373_p11 = por %p372_p10, %p371_p9 }
 0x1ca   :  { %p374_p12 = pnand %p373_p11, %p367_p8 }
 0x1cc   :  { %377 = shalt.err (!%p374_p12)
}
 0x1cd   :  { %s378_s29 = scalar_lea.hbm %s521_s6, 384 }
 0x1ce   :  { %p379_p13 = scmp.ne.s32.totalorder %s521_s6, %s378_s29  ;;  %p382_p0 = scmp.lt.u32.totalorder %s378_s29, %s521_s6 }
 0x1d0   :  { %p384_p1 = pnand %p382_p0, %p379_p13 }
 0x1d2   :  { %387 = shalt.err (!%p384_p1)
}
 0x1d3   :  { %274 = dma.vmem_to_hbm [thread:$0]  %s269_s27, 384, %s521_s6, [#allocation5], %s396_s22, %s396_s22, %s397_s23  }
 0x1d4   :  { %388 = dma.done.wait [#allocation3], 384  }
 0x1d5   :  { %389 = vsyncadd [#allocation3], 4294966912 }
 0x1d6   :  { %390 = dma.done.wait [#allocation5], 384  }
 0x1d7   :  { %391 = vsyncadd [#allocation5], 4294966912 }
 0x1d8   :  { %281 = vsyncpa [#allocation3], 1 }
 0x1d9   :  { %282 = vsyncpa [#allocation5], 1 }

</bundles_post_ra>
